<compile_context>
chip_gen: v5e
topology: v5e:2x2
jax: 0.10.0
libtpu: 0.0.40
codegen_flags: <defaults>
</compile_context>

<pallas_src>
import functools

import jax
import jax.numpy as jnp
from jax.experimental import pallas as pl
from jax.experimental.pallas import tpu as pltpu


def _logsoftmax_pieces(x, tgt):
    """Shared math: returns (logp_target, p_target) per row, shape (TN, 1)."""
    m = jnp.max(x, axis=-1, keepdims=True)                       # (TN, 1)
    z = x - m
    sum_exp = jnp.sum(jnp.exp(z), axis=-1, keepdims=True)        # (TN, 1)
    lse = jnp.log(sum_exp)

    # gather z at the target class with a single one-hot masked reduce
    # (avoids materializing the full (TN, C) log-prob array just to pick one
    # element per row).
    cidx = jax.lax.broadcasted_iota(jnp.int32, x.shape, 1)
    hit = cidx == tgt
    z_t = jnp.sum(jnp.where(hit, z, 0.0), axis=-1, keepdims=True)

    logp_t = z_t - lse                                           # (TN, 1)
    p_t = jnp.exp(logp_t)                                        # per-row exp
    return hit, logp_t, p_t


def _focal_kernel_scalar(x_ref, t_ref, out_ref, *, gamma, alpha):
    x = x_ref[...].astype(jnp.float32)          # (TN, C), upcast (bf16 ok)
    tgt = t_ref[...]                            # (TN, 1) int32, -1 == padding

    _, logp_t, p_t = _logsoftmax_pieces(x, tgt)
    w = (1.0 - p_t) ** gamma * alpha            # python-int gamma -> exact pow
    loss = -w * logp_t

    # padding rows (target == -1) contribute exactly 0, then one partial sum
    # per tile (its own output block -> grid is fully parallel).
    loss = jnp.where(tgt >= 0, loss, 0.0)
    out_ref[...] = jnp.sum(loss, axis=0, keepdims=True).reshape(1, 1, 1)


def _focal_kernel_vec(x_ref, t_ref, a_ref, out_ref, *, gamma):
    x = x_ref[...].astype(jnp.float32)          # (TN, C)
    tgt = t_ref[...]                            # (TN, 1) int32
    a_row = a_ref[...]                          # (1, C) f32 per-class alpha

    hit, logp_t, p_t = _logsoftmax_pieces(x, tgt)
    # alpha[target] via the same one-hot mask (one extra XLU reduce).
    alpha_t = jnp.sum(jnp.where(hit, a_row, 0.0), axis=-1, keepdims=True)
    w = (1.0 - p_t) ** gamma * alpha_t
    loss = -w * logp_t

    loss = jnp.where(tgt >= 0, loss, 0.0)
    out_ref[...] = jnp.sum(loss, axis=0, keepdims=True).reshape(1, 1, 1)


def focal_loss(inputs, targets, *, gamma=2, alpha=0.75, reduction="mean",
               tile_n=1024):
    """inputs: (N, C) f32/bf16 logits; targets: (N,) integer class indices.

    alpha may be a python scalar (uniform weighting, fast path) or a (C,)
    per-class weight vector (matches `self.alpha[targets]` in the module).
    """
    n, c = inputs.shape
    itemsize = jnp.dtype(inputs.dtype).itemsize
    sub = 8 if itemsize >= 4 else 16            # sublane packing: f32=8, bf16=16
    alpha_is_vec = jnp.ndim(alpha) > 0

    # Size the row tile: big enough to amortize the ~0.35 us/step pipeline
    # overhead (memory-bound kernel), small enough that the double-buffered
    # I/O tiles plus a handful of f32 (TN, C_pad) temporaries fit the budget.
    c_pad = -(-c // 128) * 128
    n_ceil = -(-n // sub) * sub
    tile_n = max(sub, min(tile_n, n_ceil))
    budget = 20 * 1024 * 1024
    while tile_n > sub and (
        tile_n * c_pad * 4 * 6 + 2 * tile_n * (c_pad * itemsize + 512) > budget
    ):
        tile_n //= 2
    tile_n = max(sub, (tile_n // sub) * sub)

    n_tiles = -(-n // tile_n)
    n_pad = n_tiles * tile_n

    targets = targets.astype(jnp.int32)
    if n_pad != n:
        inputs = jnp.pad(inputs, ((0, n_pad - n), (0, 0)))
        targets = jnp.pad(targets, (0, n_pad - n), constant_values=-1)
    targets2d = targets.reshape(n_pad, 1)

    in_specs = [
        pl.BlockSpec((tile_n, c), lambda i: (i, 0)),   # logits tile
        pl.BlockSpec((tile_n, 1), lambda i: (i, 0)),   # targets tile
    ]
    if alpha_is_vec:
        alpha_arr = jnp.asarray(alpha, jnp.float32).reshape(1, c)
        in_specs.append(pl.BlockSpec((1, c), lambda i: (0, 0)))  # alpha row
        kernel = functools.partial(_focal_kernel_vec, gamma=gamma)
        args = (inputs, targets2d, alpha_arr)
    else:
        kernel = functools.partial(
            _focal_kernel_scalar, gamma=gamma, alpha=float(alpha))
        args = (inputs, targets2d)

    partials = pl.pallas_call(
        kernel,
        out_shape=jax.ShapeDtypeStruct((n_tiles, 1, 1), jnp.float32),
        grid=(n_tiles,),
        in_specs=in_specs,
        out_specs=pl.BlockSpec((1, 1, 1), lambda i: (i, 0, 0)),
        compiler_params=pltpu.CompilerParams(
            # per-tile partial outputs -> no cross-step accumulator, so the
            # grid axis is truly parallel (uses both v7x TensorCores).
            dimension_semantics=("parallel",),
            # budget loop keeps the working set < ~20 MiB; 32 MiB scoped VMEM
            # is safe on v5e/v6e (128 MiB physical) and v7x (64 MiB physical).
            vmem_limit_bytes=32 * 1024 * 1024,
        ),
    )(*args)

    total = jnp.sum(partials)
    if reduction == "mean":
        return total / jnp.float32(n)
    if reduction == "sum":
        return total
    # TODO(synk): reduction='none' (per-element loss tensor) would need a
    # per-row output block; only 'mean'/'sum' are implemented here.
    raise NotImplementedError(f"reduction={reduction!r}")


def focal_loss_ref(inputs, targets, *, gamma=2, alpha=0.75):
    logp = jax.nn.log_softmax(inputs.astype(jnp.float32), axis=1)
    n = inputs.shape[0]
    logp_t = logp[jnp.arange(n), targets]
    p_t = jnp.exp(logp_t)
    a = jnp.asarray(alpha)[targets] if jnp.ndim(alpha) > 0 else alpha
    w = (1.0 - p_t) ** gamma * a
    return jnp.mean(-w * logp_t)


if __name__ == "__main__":
    key = jax.random.PRNGKey(0)
    k1, k2, k3, k4, k5 = jax.random.split(key, 5)

    # Small shapes consistent with the module: (N, C) logits + (N,) class ids.
    N, C = 16, 32
    inputs = jax.random.normal(k1, (N, C), dtype=jnp.float32)
    targets = jax.random.randint(k2, (N,), 0, C, dtype=jnp.int32)

    out = focal_loss(inputs, targets)
    jax.block_until_ready(out)
    ref = focal_loss_ref(inputs, targets)
    assert jnp.allclose(out, ref, rtol=1e-5, atol=1e-6), (out, ref)

    # Ragged N with a forced small tile: exercises the padding path and the
    # multi-tile parallel partial-sum outputs.
    N2, C2 = 23, 40
    inputs2 = jax.random.normal(k3, (N2, C2), dtype=jnp.float32)
    targets2 = jax.random.randint(k4, (N2,), 0, C2, dtype=jnp.int32)
    out2 = focal_loss(inputs2, targets2, tile_n=8)
    jax.block_until_ready(out2)
    ref2 = focal_loss_ref(inputs2, targets2)
    assert jnp.allclose(out2, ref2, rtol=1e-5, atol=1e-6), (out2, ref2)

    # Per-class alpha vector (the literal `self.alpha[targets]` semantics).
    alpha_vec = jax.random.uniform(k5, (C,), minval=0.25, maxval=1.0)
    out3 = focal_loss(inputs, targets, alpha=alpha_vec)
    jax.block_until_ready(out3)
    ref3 = focal_loss_ref(inputs, targets, alpha=alpha_vec)
    assert jnp.allclose(out3, ref3, rtol=1e-5, atol=1e-6), (out3, ref3)

    print("KERNEL_OK")
</pallas_src>

<mosaic_0001>
module attributes {stable_mosaic.version = 11 : i64} {
  func.func @_focal_kernel_scalar(%arg0: i32, %arg1: memref<16x32xf32, #tpu.memory_space<vmem>>, %arg2: memref<16x1xi32, #tpu.memory_space<vmem>>, %arg3: memref<1x1x1xf32, #tpu.memory_space<vmem>>) attributes {dimension_semantics = [#tpu.dimension_semantics<parallel>], iteration_bounds = array<i64: 1>, scalar_prefetch = 0 : i64, scratch_operands = 0 : i64, tpu.core_type = #tpu.core_type<tc>, window_params = [{transform_indices = @transform_0, window_bounds = array<i64: 16, 32>}, {transform_indices = @transform_1, window_bounds = array<i64: 16, 1>}, {transform_indices = @transform_2, window_bounds = array<i64: 1, 1, 1>}]} {
    %c0 = arith.constant 0 : index
    %c0_0 = arith.constant 0 : index
    %0 = vector.load %arg1[%c0, %c0_0] : memref<16x32xf32, #tpu.memory_space<vmem>>, vector<16x32xf32>
    %c0_1 = arith.constant 0 : index
    %c0_2 = arith.constant 0 : index
    %1 = vector.load %arg2[%c0_1, %c0_2] : memref<16x1xi32, #tpu.memory_space<vmem>>, vector<16x1xi32>
    %cst = arith.constant dense<0xFF800000> : vector<16xf32>
    %2 = vector.multi_reduction <maximumf>, %0, %cst [1] : vector<16x32xf32> to vector<16xf32>
    %3 = vector.shape_cast %2 : vector<16xf32> to vector<16x1xf32>
    %4 = vector.broadcast %3 : vector<16x1xf32> to vector<16x32xf32>
    %5 = arith.subf %0, %4 : vector<16x32xf32>
    %6 = math.exp %5 : vector<16x32xf32>
    %cst_3 = arith.constant dense<0.000000e+00> : vector<16xf32>
    %7 = vector.multi_reduction <add>, %6, %cst_3 [1] : vector<16x32xf32> to vector<16xf32>
    %8 = vector.shape_cast %7 : vector<16xf32> to vector<16x1xf32>
    %9 = math.log %8 : vector<16x1xf32>
    %10 = tpu.iota {dimensions = array<i32: 1>} : vector<16x32xi32>
    %11 = vector.broadcast %1 : vector<16x1xi32> to vector<16x32xi32>
    %12 = arith.cmpi eq, %10, %11 : vector<16x32xi32>
    %cst_4 = arith.constant 0.000000e+00 : f32
    %13 = vector.broadcast %cst_4 : f32 to vector<16x32xf32>
    %14 = arith.select %12, %5, %13 : vector<16x32xi1>, vector<16x32xf32>
    %cst_5 = arith.constant dense<0.000000e+00> : vector<16xf32>
    %15 = vector.multi_reduction <add>, %14, %cst_5 [1] : vector<16x32xf32> to vector<16xf32>
    %16 = vector.shape_cast %15 : vector<16xf32> to vector<16x1xf32>
    %17 = arith.subf %16, %9 : vector<16x1xf32>
    %18 = math.exp %17 : vector<16x1xf32>
    %cst_6 = arith.constant 1.000000e+00 : f32
    %19 = vector.broadcast %cst_6 : f32 to vector<16x1xf32>
    %20 = arith.subf %19, %18 : vector<16x1xf32>
    %21 = arith.mulf %20, %20 : vector<16x1xf32>
    %cst_7 = arith.constant 7.500000e-01 : f32
    %22 = vector.broadcast %cst_7 : f32 to vector<16x1xf32>
    %23 = arith.mulf %21, %22 : vector<16x1xf32>
    %cst_8 = arith.constant 0.000000e+00 : f32
    %24 = vector.broadcast %cst_8 : f32 to vector<16x1xf32>
    %25 = arith.subf %24, %23 : vector<16x1xf32>
    %26 = arith.mulf %25, %17 : vector<16x1xf32>
    %c0_i32 = arith.constant 0 : i32
    %27 = vector.broadcast %c0_i32 : i32 to vector<16x1xi32>
    %28 = arith.cmpi sge, %1, %27 : vector<16x1xi32>
    %cst_9 = arith.constant 0.000000e+00 : f32
    %29 = vector.broadcast %cst_9 : f32 to vector<16x1xf32>
    %30 = arith.select %28, %26, %29 : vector<16x1xi1>, vector<16x1xf32>
    %cst_10 = arith.constant dense<0.000000e+00> : vector<1xf32>
    %31 = vector.multi_reduction <add>, %30, %cst_10 [0] : vector<16x1xf32> to vector<1xf32>
    %32 = vector.shape_cast %31 : vector<1xf32> to vector<1x1xf32>
    %33 = vector.shape_cast %32 : vector<1x1xf32> to vector<1x1x1xf32>
    %c0_11 = arith.constant 0 : index
    %c0_12 = arith.constant 0 : index
    %c0_13 = arith.constant 0 : index
    %34 = vector.load %arg3[%c0_11, %c0_12, %c0_13] : memref<1x1x1xf32, #tpu.memory_space<vmem>>, vector<1x1x1xf32>
    tpu.vector_store %arg3[%c0_11, %c0_12, %c0_13], %33 {strides = array<i32>} : memref<1x1x1xf32, #tpu.memory_space<vmem>>, vector<1x1x1xf32>,
    return
  }
  func.func @transform_0(%arg0: i32) -> (i32, i32) {
    %c0_i32 = arith.constant 0 : i32
    %c0_i32_0 = arith.constant 0 : i32
    return %arg0, %c0_i32 : i32, i32
  }
  func.func @transform_1(%arg0: i32) -> (i32, i32) {
    %c0_i32 = arith.constant 0 : i32
    %c0_i32_0 = arith.constant 0 : i32
    return %arg0, %c0_i32 : i32, i32
  }
  func.func @transform_2(%arg0: i32) -> (i32, i32, i32) {
    %c0_i32 = arith.constant 0 : i32
    %c0_i32_0 = arith.constant 0 : i32
    %c0_i32_1 = arith.constant 0 : i32
    return %arg0, %c0_i32, %c0_i32_0 : i32, i32, i32
  }
}

</mosaic_0001>

<bundles_post_ra>
// kernel: tpu_custom_call.1
= control target key start
LH: loop header
LB: loop body
LE: loop exit
PB: predicated region body
PF: predicated region fallthrough
CT: control target
= control target key end

     0   :  { %vm16_vm0 = vcmask 261120   ;;  %v147_v3 = vmov 0   ;;  %s189_s0 = inlined_call_operand.vmem [shape: f32[16,32], index: 0, kind: input, shape index: {}]   ;;  %s190_s1 = inlined_call_operand.vmem [shape: s32[16,1], index: 1, kind: input, shape index: {}]   ;;  %s191_s2 = inlined_call_operand.hbm [shape: f32[1,1,1], index: 2, kind: output, shape index: {}]  }
   0x1   :  { %v12_v0 = vld [vmem:[%s189_s0] sm:$0xff]  ;;  %107 = vset.pattern.permute.xlu1 %v147_v3  ;;  %108 = vset.pattern.permute.xlu0 %v147_v3 }
   0x2   :  { %v170_v1 = vld [vmem:[%s190_s1] sm:$0xff]  ;;  %v17_v2 = vsel %vm16_vm0, %v12_v0, -inf }
   0x3   :  { %7 = vsyncpa [#allocation3], 0  ;;  %18 = vmax.xlane.f32.xlu0 %v17_v2  ;;  %42 = vperm.xlu1 %107, %v170_v1   ;;  %v13_v4 = vld [vmem:[%s189_s0 + $0x8] sm:$0xff]  ;;  %v39_v7 = vlaneseq  ;;  %vm73_vm3 = vcmp.ge.s32.totalorder %v170_v1, 0  ;;  %vm77_vm5 = vcmask 7168   ;;  %s148_s0 = smov [#allocation2]  }
   0x4   :  { %v20_v5 = vsel %vm16_vm0, %v13_v4, -inf  ;;  %v15_v6 = vld [vmem:[%s190_s1 + $0x8] sm:$0xff]  ;;  %s94_s1 = sshll.u32 %s148_s0, 4  ;;  %s96_s19 = sshll.u32 %s191_s2, 4  ;;  %vm87_vm6 = vcmask 0   ;;  %s95_s1 = int_to_ptr.vmem [resolvable:$true] %s94_s1  ;;  %s97_s19 = int_to_ptr.hbm [resolvable:$true] %s96_s19 }
   0x5   :  { %v40_v8 = vand.u32 127, %v39_v7  ;;  %vm74_vm4 = vcmp.ge.s32.totalorder %v15_v6, 0 }
   0xb   :  { %21 = vmax.xlane.f32.xlu0 %v20_v5  ;;  %45 = vperm.xlu1 %107, %v15_v6  }
  0x75   :  { %v43_v9 = vpop.permute.xlu1 %42 }
  0x76   :  { %v19_v10 = vpop.xlane.xlu0 %18  ;;  %vm47_vm1 = vcmp.eq.s32.totalorder %v40_v8, %v43_v9 }
  0x77   :  { %v23_v11 = vsub.f32 %v12_v0, %v19_v10 }
  0x79   :  { %v25_v12 = vmul.f32 1.442695, %v23_v11  ;;  %v49_v13 = vsel %vm47_vm1, %v23_v11, 0.0 }
  0x7a   :  { %v51_v14 = vsel %vm16_vm0, %v49_v13, 0.0 }
  0x7b   :  { %109 = vpow2.f32 %v25_v12  ;;  %52 = vadd.xlane.f32.xlu0 %v51_v14 }
  0x7d   :  { %v46_v15 = vpop.permute.xlu1 %45 }
  0x7e   :  { %v22_v16 = vpop.xlane.xlu0 %21  ;;  %vm48_vm2 = vcmp.eq.s32.totalorder %v40_v8, %v46_v15 }
  0x7f   :  { %v24_v17 = vsub.f32 %v13_v4, %v22_v16 }
  0x81   :  { %v110_v18 = vpop.eup %109  ;;  %v27_v19 = vmul.f32 1.442695, %v24_v17  ;;  %v50_v20 = vsel %vm48_vm2, %v24_v17, 0.0 }
  0x82   :  { %v29_v21 = vsel %vm16_vm0, %v110_v18, 0.0  ;;  %v54_v22 = vsel %vm16_vm0, %v50_v20, 0.0 }
  0x83   :  { %111 = vpow2.f32 %v27_v19  ;;  %30 = vadd.xlane.f32.xlu2 %v29_v21  ;;  %55 = vadd.xlane.f32.xlu1 %v54_v22 }
  0x89   :  { %v112_v23 = vpop.eup %111 }
  0x8a   :  { %v32_v24 = vsel %vm16_vm0, %v112_v23, 0.0 }
  0x8b   :  { %33 = vadd.xlane.f32.xlu2 %v32_v24 }
  0xee   :  { %v53_v29 = vpop.xlane.xlu0 %52 }
  0xf6   :  { %v31_v25 = vpop.xlane.xlu2 %30  ;;  %v56_v34 = vpop.xlane.xlu1 %55 }
  0xf7   :  { %113 = vlog2.f32 %v31_v25 }
  0xfd   :  { %v114_v26 = vpop.eup %113 }
  0xfe   :  { %v36_v27 = vmul.f32 0.6931472, %v114_v26  ;;  %v34_v28 = vpop.xlane.xlu2 %33 }
  0xff   :  { %115 = vlog2.f32 %v34_v28 }
 0x100   :  { %v57_v30 = vsub.f32 %v53_v29, %v36_v27 }
 0x102   :  { %v59_v31 = vmul.f32 1.442695, %v57_v30 }
 0x104   :  { %117 = vpow2.f32 %v59_v31 }
 0x105   :  { %v116_v32 = vpop.eup %115 }
 0x106   :  { %v38_v33 = vmul.f32 0.6931472, %v116_v32 }
 0x108   :  { %v58_v35 = vsub.f32 %v56_v34, %v38_v33 }
 0x10a   :  { %v118_v36 = vpop.eup %117  ;;  %v61_v37 = vmul.f32 1.442695, %v58_v35 }
 0x10b   :  { %v63_v38 = vsub.f32 1.0, %v118_v36 }
 0x10c   :  { %119 = vpow2.f32 %v61_v37 }
 0x10d   :  { %v65_v39 = vmul.f32 %v63_v38, %v63_v38 }
 0x10f   :  { %v67_v40 = vmul.f32 0.75, %v65_v39 }
 0x111   :  { %v69_v42 = vsub.f32 0.0, %v67_v40 }
 0x112   :  { %v120_v41 = vpop.eup %119 }
 0x113   :  { %v64_v43 = vsub.f32 1.0, %v120_v41  ;;  %v71_v45 = vmul.f32 %v69_v42, %v57_v30 }
 0x115   :  { %v66_v44 = vmul.f32 %v64_v43, %v64_v43  ;;  %v75_v48 = vsel %vm73_vm3, %v71_v45, 0.0 }
 0x116   :  { %v78_v51 = vsel %vm77_vm5, %v75_v48, 0.0 }
 0x117   :  { %v68_v46 = vmul.f32 0.75, %v66_v44 }
 0x119   :  { %v70_v47 = vsub.f32 0.0, %v68_v46 }
 0x11b   :  { %v72_v49 = vmul.f32 %v70_v47, %v58_v35 }
 0x11d   :  { %v76_v50 = vsel %vm74_vm4, %v72_v49, 0.0 }
 0x11e   :  { %v79_v52 = vsel %vm77_vm5, %v76_v50, 0.0 }
 0x11f   :  { %v80_v53 = vadd.f32 %v79_v52, %v78_v51 }
 0x121   :  { %v81_v54 = vrot.slane %v80_v53, 4 }
 0x123   :  { %v82_v55 = vadd.f32 %v81_v54, %v80_v53 }
 0x125   :  { %v83_v56 = vrot.slane %v82_v55, 2 }
 0x127   :  { %v84_v57 = vadd.f32 %v83_v56, %v82_v55 }
 0x129   :  { %v85_v58 = vrot.slane %v84_v57, 1 }
 0x12b   :  { %v86_v59 = vadd.f32 %v85_v58, %v84_v57 }
 0x12d   :  { %88 = vst.msk [vmem:[#allocation2] sm:$0x1] %vm87_vm6, %v86_v59 }
 0x12e   :  { %99 = dma.vmem_to_hbm [thread:$0]  %s95_s1, 16, %s97_s19, [#allocation3]  }
 0x12f   :  { %145 = dma.done.wait [#allocation3], 16  }
 0x130   :  { %146 = vsyncadd [#allocation3], 4294967280 }
 0x131   :  { %104 = vsyncpa [#allocation3], 1 }

</bundles_post_ra>
